<compile_context>
chip_gen: v7x
topology: tpu7x:2x2x1
jax: 0.10.0
libtpu: 0.0.40
codegen_flags: <defaults>
</compile_context>

<pallas_src>
import jax
import jax.numpy as jnp
from jax.experimental import pallas as pl
from jax.experimental.pallas import tpu as pltpu

SCALE = 10  # nn.Upsample(scale_factor=10, mode='nearest')


def _fused_upsample_conv_relu_kernel(w_ref, b_ref, rep_ref, x_ref, o_ref):
    # w_ref   : SMEM (C*C,)             1x1 conv weights, row-major (out_ch, in_ch)
    # b_ref   : SMEM (C,)               bias
    # rep_ref : VMEM (W, SCALE*SCALE*W) exact 0/1 replication matrix:
    #                                   rep[w, dh*SCALE*W + w*SCALE + dw] = 1
    # x_ref   : VMEM (1, C, TH, W)      pre-upsample input tile
    # o_ref   : VMEM (1, C, TH, SCALE*SCALE*W) output tile; lane index
    #           q = dh*(SCALE*W) + w*SCALE + dw of row h corresponds to output
    #           pixel (h*SCALE + dh, w*SCALE + dw) of the upsampled image.
    _, C, TH, W = x_ref.shape

    # Constant replication matrix: loaded once, hoisted above the channel loop
    # (JAX does not CSE per-channel rebuilds/broadcasts).
    rep = rep_ref[...]                                    # (W, SCALE*SCALE*W)

    # Load the small input channels once (tiny vs. the output traffic).
    xs = [x_ref[0, i, :, :] for i in range(C)]            # each (TH, W)

    for o in range(C):
        # 1x1 conv (channel mix) + bias + ReLU as scalar-broadcast FMAs on the
        # small (TH, W) slab -- 100x less VPU work than post-upsample.
        y = xs[0] * w_ref[o * C + 0]
        for i in range(1, C):
            y = y + xs[i] * w_ref[o * C + i]
        y = jnp.maximum(y + b_ref[o], 0.0)                # (TH, W)

        # Both W- and H- nearest-neighbour replication in ONE MXU matmul with
        # an exact 0/1 selection matrix (x*1.0 copies are exact even under the
        # MXU's multi-pass f32 emulation), then a single lane-dense store of
        # the whole flattened row block for this channel.
        full = jnp.dot(y, rep, preferred_element_type=jnp.float32)  # (TH, SSW)
        o_ref[0, o, :, :] = full


def _pick_row_tile(B, H, W, C, target_block_bytes=8 * 1024 * 1024):
    """Input rows per grid step.  Keeps the (C, TH, 100*W) f32 output block
    around target_block_bytes (double-buffered output stays well under the
    raised VMEM limit, incl. v7x's 64 MiB physical VMEM).  When B == 1, cap
    the tile so the row axis has >= 2 grid steps (both v7x TCs get work)."""
    row_bytes = C * SCALE * SCALE * W * 4
    th = max(1, target_block_bytes // row_bytes)
    if B == 1:
        th = min(th, max(1, pl.cdiv(H, 2)))
    if th >= H:
        return H                      # full extent is always a legal block dim
    th = max(8, (th // 8) * 8)        # keep the sublane dim a multiple of 8
    return min(th, H)


def simple_model_forward(x, weight, bias):
    """SimpleModel.forward: nearest upsample x10 -> Conv2d(3,3,1x1) -> ReLU.

    x: (B, 3, H, W) float32 NCHW. Returns (B, 3, 10H, 10W) float32 NCHW.
    """
    B, C, H, W = x.shape
    Hs, Ws = H * SCALE, W * SCALE
    SSW = SCALE * Ws                   # = SCALE*SCALE*W, flattened lane width

    w_flat = weight.reshape(C * C).astype(jnp.float32)   # (out_ch, in_ch) row-major
    b_vec = bias.reshape(C).astype(jnp.float32)

    # Exact 0/1 selection matrix encoding BOTH W- and H-replication:
    # column q = dh*Ws + w*SCALE + dw sources input column w.
    cols = jnp.arange(SSW, dtype=jnp.int32)
    src_w = (cols % Ws) // SCALE
    rep = (src_w[None, :] == jnp.arange(W, dtype=jnp.int32)[:, None]
           ).astype(jnp.float32)                          # (W, SSW)

    TH = _pick_row_tile(B, H, W, C)
    grid = (B, pl.cdiv(H, TH))

    # Output produced in a (B, C, H, SSW) view: its row-major order equals
    # (B, C, Hs, Ws), so the reshape below is a free metadata change.
    out_flat = pl.pallas_call(
        _fused_upsample_conv_relu_kernel,
        out_shape=jax.ShapeDtypeStruct((B, C, H, SSW), jnp.float32),
        grid_spec=pltpu.PrefetchScalarGridSpec(
            num_scalar_prefetch=0,
            grid=grid,
            in_specs=[
                pl.BlockSpec(memory_space=pltpu.MemorySpace.SMEM),   # weights
                pl.BlockSpec(memory_space=pltpu.MemorySpace.SMEM),   # bias
                pl.BlockSpec((W, SSW), lambda b, j: (0, 0)),         # rep matrix
                pl.BlockSpec((1, C, TH, W), lambda b, j: (b, 0, j, 0)),
            ],
            out_specs=pl.BlockSpec((1, C, TH, SSW),
                                   lambda b, j: (b, 0, j, 0)),
        ),
        compiler_params=pltpu.CompilerParams(
            dimension_semantics=("parallel", "parallel"),
            vmem_limit_bytes=40 << 20,
        ),
    )(w_flat, b_vec, rep, x)

    return out_flat.reshape(B, C, Hs, Ws)


if __name__ == "__main__":
    key = jax.random.PRNGKey(0)
    k_x, k_w, k_b = jax.random.split(key, 3)

    # Small NCHW input consistent with the module (Conv2d expects 3 channels).
    B, C, H, W = 2, 3, 16, 16
    x = jax.random.normal(k_x, (B, C, H, W), dtype=jnp.float32)

    # Conv2d(3, 3, kernel_size=1): weight (3,3,1,1), bias (3,)
    fan_in = C * 1 * 1
    bound = 1.0 / (fan_in ** 0.5)
    weight = jax.random.uniform(k_w, (C, C, 1, 1), jnp.float32, -bound, bound)
    bias = jax.random.uniform(k_b, (C,), jnp.float32, -bound, bound)

    out = simple_model_forward(x, weight, bias)
    out = jax.block_until_ready(out)

    # Pure-JAX reference (upsample -> conv -> relu), same FMA order as kernel.
    w2d = weight.reshape(C, C)
    xu = jnp.repeat(jnp.repeat(x, SCALE, axis=2), SCALE, axis=3)
    ref = jnp.stack(
        [xu[:, 0] * w2d[o, 0] + xu[:, 1] * w2d[o, 1] + xu[:, 2] * w2d[o, 2]
         + bias[o] for o in range(C)],
        axis=1)
    ref = jnp.maximum(ref, 0.0)

    assert out.shape == (B, C, H * SCALE, W * SCALE)
    assert jnp.allclose(out, ref, atol=1e-5, rtol=1e-5), float(
        jnp.max(jnp.abs(out - ref)))

    print("KERNEL_OK")
</pallas_src>

<mosaic_0001>
module attributes {stable_mosaic.version = 11 : i64} {
  func.func @_fused_upsample_conv_relu_kernel(%arg0: i32, %arg1: i32, %arg2: memref<9xf32, #tpu.memory_space<smem>>, %arg3: memref<3xf32, #tpu.memory_space<smem>>, %arg4: memref<16x1600xf32, #tpu.memory_space<vmem>>, %arg5: memref<1x3x16x16xf32, #tpu.memory_space<vmem>>, %arg6: memref<1x3x16x1600xf32, #tpu.memory_space<vmem>>) attributes {dimension_semantics = [#tpu.dimension_semantics<parallel>, #tpu.dimension_semantics<parallel>], iteration_bounds = array<i64: 2, 1>, scalar_prefetch = 0 : i64, scratch_operands = 0 : i64, tpu.core_type = #tpu.core_type<tc>, window_params = [{transform_indices = @transform_0, window_bounds = array<i64: 9>}, {transform_indices = @transform_1, window_bounds = array<i64: 3>}, {pipeline_mode = #tpu.pipeline_mode<synchronous>, transform_indices = @transform_2, window_bounds = array<i64: 16, 1600>}, {transform_indices = @transform_3, window_bounds = array<i64: 1, 3, 16, 16>}, {transform_indices = @transform_4, window_bounds = array<i64: 1, 3, 16, 1600>}]} {
    %c0 = arith.constant 0 : index
    %c0_0 = arith.constant 0 : index
    %0 = vector.load %arg4[%c0, %c0_0] : memref<16x1600xf32, #tpu.memory_space<vmem>>, vector<16x1600xf32>
    %c0_1 = arith.constant 0 : index
    %c0_2 = arith.constant 0 : index
    %c0_3 = arith.constant 0 : index
    %c0_4 = arith.constant 0 : index
    %1 = vector.load %arg5[%c0_1, %c0_2, %c0_3, %c0_4] : memref<1x3x16x16xf32, #tpu.memory_space<vmem>>, vector<1x1x16x16xf32>
    %2 = vector.shape_cast %1 : vector<1x1x16x16xf32> to vector<16x16xf32>
    %c0_5 = arith.constant 0 : index
    %c1 = arith.constant 1 : index
    %c0_6 = arith.constant 0 : index
    %c0_7 = arith.constant 0 : index
    %3 = vector.load %arg5[%c0_5, %c1, %c0_6, %c0_7] : memref<1x3x16x16xf32, #tpu.memory_space<vmem>>, vector<1x1x16x16xf32>
    %4 = vector.shape_cast %3 : vector<1x1x16x16xf32> to vector<16x16xf32>
    %c0_8 = arith.constant 0 : index
    %c2 = arith.constant 2 : index
    %c0_9 = arith.constant 0 : index
    %c0_10 = arith.constant 0 : index
    %5 = vector.load %arg5[%c0_8, %c2, %c0_9, %c0_10] : memref<1x3x16x16xf32, #tpu.memory_space<vmem>>, vector<1x1x16x16xf32>
    %6 = vector.shape_cast %5 : vector<1x1x16x16xf32> to vector<16x16xf32>
    %c0_11 = arith.constant 0 : index
    %7 = memref.load %arg2[%c0_11] : memref<9xf32, #tpu.memory_space<smem>>
    %8 = vector.broadcast %7 : f32 to vector<16x16xf32>
    %9 = arith.mulf %2, %8 : vector<16x16xf32>
    %c1_12 = arith.constant 1 : index
    %10 = memref.load %arg2[%c1_12] : memref<9xf32, #tpu.memory_space<smem>>
    %11 = vector.broadcast %10 : f32 to vector<16x16xf32>
    %12 = arith.mulf %4, %11 : vector<16x16xf32>
    %13 = arith.addf %9, %12 : vector<16x16xf32>
    %c2_13 = arith.constant 2 : index
    %14 = memref.load %arg2[%c2_13] : memref<9xf32, #tpu.memory_space<smem>>
    %15 = vector.broadcast %14 : f32 to vector<16x16xf32>
    %16 = arith.mulf %6, %15 : vector<16x16xf32>
    %17 = arith.addf %13, %16 : vector<16x16xf32>
    %c0_14 = arith.constant 0 : index
    %18 = memref.load %arg3[%c0_14] : memref<3xf32, #tpu.memory_space<smem>>
    %19 = vector.broadcast %18 : f32 to vector<16x16xf32>
    %20 = arith.addf %17, %19 : vector<16x16xf32>
    %cst = arith.constant 0.000000e+00 : f32
    %21 = vector.broadcast %cst : f32 to vector<16x16xf32>
    %22 = arith.maximumf %20, %21 : vector<16x16xf32>
    %cst_15 = arith.constant dense<0.000000e+00> : vector<16x1600xf32>
    %23 = tpu.matmul %22, %0, %cst_15 {dimension_numbers = #tpu.dot_dimension_numbers<[1], [0], [0], [1], [0, 0, 1, 1], [], []>} : vector<16x16xf32>, vector<16x1600xf32>, vector<16x1600xf32> -> vector<16x1600xf32>
    %c0_16 = arith.constant 0 : index
    %c0_17 = arith.constant 0 : index
    %c0_18 = arith.constant 0 : index
    %c0_19 = arith.constant 0 : index
    %24 = vector.load %arg6[%c0_16, %c0_17, %c0_18, %c0_19] : memref<1x3x16x1600xf32, #tpu.memory_space<vmem>>, vector<1x1x16x1600xf32>
    %25 = vector.shape_cast %24 : vector<1x1x16x1600xf32> to vector<16x1600xf32>
    %26 = vector.shape_cast %23 : vector<16x1600xf32> to vector<1x1x16x1600xf32>
    tpu.vector_store %arg6[%c0_16, %c0_17, %c0_18, %c0_19], %26 {strides = array<i32>} : memref<1x3x16x1600xf32, #tpu.memory_space<vmem>>, vector<1x1x16x1600xf32>,
    %c3 = arith.constant 3 : index
    %27 = memref.load %arg2[%c3] : memref<9xf32, #tpu.memory_space<smem>>
    %28 = vector.broadcast %27 : f32 to vector<16x16xf32>
    %29 = arith.mulf %2, %28 : vector<16x16xf32>
    %c4 = arith.constant 4 : index
    %30 = memref.load %arg2[%c4] : memref<9xf32, #tpu.memory_space<smem>>
    %31 = vector.broadcast %30 : f32 to vector<16x16xf32>
    %32 = arith.mulf %4, %31 : vector<16x16xf32>
    %33 = arith.addf %29, %32 : vector<16x16xf32>
    %c5 = arith.constant 5 : index
    %34 = memref.load %arg2[%c5] : memref<9xf32, #tpu.memory_space<smem>>
    %35 = vector.broadcast %34 : f32 to vector<16x16xf32>
    %36 = arith.mulf %6, %35 : vector<16x16xf32>
    %37 = arith.addf %33, %36 : vector<16x16xf32>
    %c1_20 = arith.constant 1 : index
    %38 = memref.load %arg3[%c1_20] : memref<3xf32, #tpu.memory_space<smem>>
    %39 = vector.broadcast %38 : f32 to vector<16x16xf32>
    %40 = arith.addf %37, %39 : vector<16x16xf32>
    %cst_21 = arith.constant 0.000000e+00 : f32
    %41 = vector.broadcast %cst_21 : f32 to vector<16x16xf32>
    %42 = arith.maximumf %40, %41 : vector<16x16xf32>
    %cst_22 = arith.constant dense<0.000000e+00> : vector<16x1600xf32>
    %43 = tpu.matmul %42, %0, %cst_22 {dimension_numbers = #tpu.dot_dimension_numbers<[1], [0], [0], [1], [0, 0, 1, 1], [], []>} : vector<16x16xf32>, vector<16x1600xf32>, vector<16x1600xf32> -> vector<16x1600xf32>
    %c0_23 = arith.constant 0 : index
    %c1_24 = arith.constant 1 : index
    %c0_25 = arith.constant 0 : index
    %c0_26 = arith.constant 0 : index
    %44 = vector.load %arg6[%c0_23, %c1_24, %c0_25, %c0_26] : memref<1x3x16x1600xf32, #tpu.memory_space<vmem>>, vector<1x1x16x1600xf32>
    %45 = vector.shape_cast %44 : vector<1x1x16x1600xf32> to vector<16x1600xf32>
    %46 = vector.shape_cast %43 : vector<16x1600xf32> to vector<1x1x16x1600xf32>
    tpu.vector_store %arg6[%c0_23, %c1_24, %c0_25, %c0_26], %46 {strides = array<i32>} : memref<1x3x16x1600xf32, #tpu.memory_space<vmem>>, vector<1x1x16x1600xf32>,
    %c6 = arith.constant 6 : index
    %47 = memref.load %arg2[%c6] : memref<9xf32, #tpu.memory_space<smem>>
    %48 = vector.broadcast %47 : f32 to vector<16x16xf32>
    %49 = arith.mulf %2, %48 : vector<16x16xf32>
    %c7 = arith.constant 7 : index
    %50 = memref.load %arg2[%c7] : memref<9xf32, #tpu.memory_space<smem>>
    %51 = vector.broadcast %50 : f32 to vector<16x16xf32>
    %52 = arith.mulf %4, %51 : vector<16x16xf32>
    %53 = arith.addf %49, %52 : vector<16x16xf32>
    %c8 = arith.constant 8 : index
    %54 = memref.load %arg2[%c8] : memref<9xf32, #tpu.memory_space<smem>>
    %55 = vector.broadcast %54 : f32 to vector<16x16xf32>
    %56 = arith.mulf %6, %55 : vector<16x16xf32>
    %57 = arith.addf %53, %56 : vector<16x16xf32>
    %c2_27 = arith.constant 2 : index
    %58 = memref.load %arg3[%c2_27] : memref<3xf32, #tpu.memory_space<smem>>
    %59 = vector.broadcast %58 : f32 to vector<16x16xf32>
    %60 = arith.addf %57, %59 : vector<16x16xf32>
    %cst_28 = arith.constant 0.000000e+00 : f32
    %61 = vector.broadcast %cst_28 : f32 to vector<16x16xf32>
    %62 = arith.maximumf %60, %61 : vector<16x16xf32>
    %cst_29 = arith.constant dense<0.000000e+00> : vector<16x1600xf32>
    %63 = tpu.matmul %62, %0, %cst_29 {dimension_numbers = #tpu.dot_dimension_numbers<[1], [0], [0], [1], [0, 0, 1, 1], [], []>} : vector<16x16xf32>, vector<16x1600xf32>, vector<16x1600xf32> -> vector<16x1600xf32>
    %c0_30 = arith.constant 0 : index
    %c2_31 = arith.constant 2 : index
    %c0_32 = arith.constant 0 : index
    %c0_33 = arith.constant 0 : index
    %64 = vector.load %arg6[%c0_30, %c2_31, %c0_32, %c0_33] : memref<1x3x16x1600xf32, #tpu.memory_space<vmem>>, vector<1x1x16x1600xf32>
    %65 = vector.shape_cast %64 : vector<1x1x16x1600xf32> to vector<16x1600xf32>
    %66 = vector.shape_cast %63 : vector<16x1600xf32> to vector<1x1x16x1600xf32>
    tpu.vector_store %arg6[%c0_30, %c2_31, %c0_32, %c0_33], %66 {strides = array<i32>} : memref<1x3x16x1600xf32, #tpu.memory_space<vmem>>, vector<1x1x16x1600xf32>,
    return
  }
  func.func @transform_0(%arg0: i32, %arg1: i32) -> i32 {
    %c0_i32 = arith.constant 0 : i32
    %c0_i32_0 = arith.constant 0 : i32
    return %c0_i32 : i32
  }
  func.func @transform_1(%arg0: i32, %arg1: i32) -> i32 {
    %c0_i32 = arith.constant 0 : i32
    %c0_i32_0 = arith.constant 0 : i32
    return %c0_i32 : i32
  }
  func.func @transform_2(%arg0: i32, %arg1: i32) -> (i32, i32) {
    %c0_i32 = arith.constant 0 : i32
    %c0_i32_0 = arith.constant 0 : i32
    %c0_i32_1 = arith.constant 0 : i32
    return %c0_i32, %c0_i32_0 : i32, i32
  }
  func.func @transform_3(%arg0: i32, %arg1: i32) -> (i32, i32, i32, i32) {
    %c0_i32 = arith.constant 0 : i32
    %c0_i32_0 = arith.constant 0 : i32
    %c0_i32_1 = arith.constant 0 : i32
    return %arg0, %c0_i32, %arg1, %c0_i32_0 : i32, i32, i32, i32
  }
  func.func @transform_4(%arg0: i32, %arg1: i32) -> (i32, i32, i32, i32) {
    %c0_i32 = arith.constant 0 : i32
    %c0_i32_0 = arith.constant 0 : i32
    %c0_i32_1 = arith.constant 0 : i32
    return %arg0, %c0_i32, %arg1, %c0_i32_0 : i32, i32, i32, i32
  }
}

</mosaic_0001>

<bundles_post_ra>
// kernel: tpu_custom_call.1
= control target key start
LH: loop header
LB: loop body
LE: loop exit
PB: predicated region body
PF: predicated region fallthrough
CT: control target
= control target key end

     0   :  { %9 = vsyncpa [#allocation5], 0  ;;  %s3373_s0 = inlined_call_operand.hbm [shape: f32[9], index: 0, kind: input, shape index: {}]   ;;  %s3374_s1 = inlined_call_operand.vmem [shape: f32[3], index: 1, kind: input, shape index: {}]   ;;  %s3375_s2 = inlined_call_operand.hbm [shape: f32[16,1600], index: 2, kind: input, shape index: {}]   ;;  %s3376_s3 = inlined_call_operand.hbm [shape: f32[2,3,16,16], index: 3, kind: input, shape index: {}]   ;;  %s3377_s4 = inlined_call_operand.hbm [shape: f32[2,3,16,1600], index: 4, kind: output, shape index: {}]  }
   0x1   :  { %10 = vsyncpa [#allocation6], 0 }
   0x2   :  { %11 = vsyncpa [#allocation3], 0 }
   0x3   :  { %12 = vsyncpa [#allocation10], 0 }
   0x4   :  { %14 = vsyncpa [#allocation10 + $0x1], 0 }
   0x5   :  { %15 = vsyncpa [#allocation4], 0 }
   0x6   :  { %17 = vsyncpa [#allocation4 + $0x1], 0  ;;  %s2791_s15 = smov 0   ;;  %s2793_s16 = smov 0  }
   0x7   :  { %s2795_s17 = smov 0   ;;  %s2797_s18 = smov 0  }
   0x8   :  { %s2799_s19 = smov 0   ;;  %s2801_s20 = smov 0  }
   0x9 LB: > { %s2227_s21 = sadd.s32 4294967295, %s2752_s20   ;;  %s2228_s22 = sadd.s32 4294967294, %s2752_s20   ;;  %s2752_s20 = sphi %s2801_s20, %s23_s20   ;;  %s2748_s19 = sphi %s2799_s19, %s3399_s19   ;;  %s2744_s18 = sphi %s2797_s18, %s3398_s18   ;;  %s2740_s17 = sphi %s2795_s17, %s3397_s17   ;;  %s2736_s16 = sphi %s2793_s16, %s3396_s16   ;;  %s2732_s15 = sphi %s2791_s15, %s3395_s15  }
   0xa   : > { %p120_p0 = scmp.ne.s32.totalorder %s2736_s16, %s2732_s15  ;;  %p2825_p1 = scmp.eq.s32.totalorder %s2227_s21, 0 }
   0xb   : > { %p2829_p2 = scmp.eq.s32.totalorder %s2227_s21, 1  ;;  %p152_p3 = scmp.eq.s32.totalorder %s2228_s22, 1 }
   0xc   : > { %s3382_s23 = scalar_select %p2825_p1, 1, 0 }
   0xd   : > { %p2835_p4 = por %p2825_p1, %p120_p0  ;;  %p2229_p5 = scmp.ge.s32.totalorder %s2752_s20, 1 }
   0xe   : > { %p2840_p6 = por %p152_p3, %p120_p0  ;;  %p159_p7 = scmp.lt.s32.totalorder %s2752_s20, 3 }
   0xf   : > { %s3384_s25 = scalar_select %p2835_p4, 1, 0 }
  0x10   : > { %s3385_s26 = scalar_select %p2840_p6, 1, 0 }
  0x11   : > { %p2845_p8 = pnand %p2229_p5, %p159_p7  ;;  %s181_s30 = sshll.u32 %s3374_s1, 4  ;;  %s182_s30 = int_to_ptr.vmem [resolvable:$true] %s181_s30 }
  0x12   : > { %s2754_s6 = smov [#allocation8]   ;;  %s2572_s10 = scalar_lea.hbm %s3373_s0, 16 }
  0x13   : > { %p2488_p10 = pneg %p2845_p8  ;;  %s191_s7 = sshll.u32 %s2754_s6, 4  ;;  %s2861_s7 = int_to_ptr.vmem [resolvable:$true] %s191_s7 }
  0x14   : > { %p2573_p12 = scmp.ne.s32.totalorder %s3373_s0, %s2572_s10  ;;  %p2579_p5 = scmp.lt.u32.totalorder %s2572_s10, %s3373_s0 }
  0x15   : > { %p2857_p11 = pnand %p2488_p10, %p2825_p1 }
  0x17   : > { %p2574_p13 = pneg %p2857_p11 }
  0x19   : > { %p2575_p0 = pnand %p2574_p13, %p2573_p12 }
  0x1b   : > { %p2576_p3 = pneg %p2575_p0 }
  0x1d   : > { %p2581_p7 = pnand %p2579_p5, %p2576_p3 }
  0x1f   : > { %2584 = shalt.err (!%p2581_p7)
}
  0x20   : > { %s2755_s21 = smov [#allocation2]   ;;  %s2585_s29 = scalar_lea.vmem %s182_s30, 16 }
  0x21   : > { %2491 = dma.hbm_to_smem (!%p2857_p11), %s3373_s0, 16, %s2755_s21, [#allocation5]  }
  0x22   : > { %p2586_p10 = scmp.ne.s32.totalorder %s182_s30, %s2585_s29  ;;  %p2593_p9 = scmp.lt.s32.totalorder %s182_s30, %s182_s30 }
  0x23   : > { %p2594_p6 = scmp.lt.s32.totalorder %s2585_s29, %s2585_s29 }
  0x24   : > { %p2588_p12 = pnand %p2586_p10, %p2574_p13 }
  0x25   : > { %p2595_p4 = por %p2594_p6, %p2593_p9 }
  0x26   : > { %p2589_p0 = pneg %p2588_p12 }
  0x28   : > { %p2596_p1 = pnand %p2595_p4, %p2589_p0 }
  0x2a   : > { %2599 = shalt.err (!%p2596_p1)
}
  0x2b   : > { %s2756_s6 = smov [#allocation7]   ;;  %s2600_s10 = scalar_lea.hbm %s3375_s2, 3328 }
  0x2c   : > { %2494 = dma.vmem_to_smem (!%p2857_p11), %s182_s30, 16, %s2756_s6, [#allocation6]  }
  0x2d   : > { %p2601_p3 = scmp.ne.s32.totalorder %s3375_s2, %s2600_s10  ;;  %p2607_p1 = scmp.lt.u32.totalorder %s2600_s10, %s3375_s2 }
  0x2f   : > { %p2603_p5 = pnand %p2601_p3, %p2574_p13 }
  0x31   : > { %p2604_p7 = pneg %p2603_p5 }
  0x33   : > { %p2609_p4 = pnand %p2607_p1, %p2604_p7 }
  0x35   : > { %2612 = shalt.err (!%p2609_p4)
}
  0x36   : > { %s2613_s30 = scalar_lea.vmem %s2861_s7, 3328  ;;  %p2621_p12 = scmp.lt.s32.totalorder %s2861_s7, %s2861_s7 }
  0x37   : > { %p2614_p6 = scmp.ne.s32.totalorder %s2861_s7, %s2613_s30  ;;  %p2622_p0 = scmp.lt.s32.totalorder %s2613_s30, %s2613_s30 }
  0x39   : > { %p2616_p9 = pnand %p2614_p6, %p2574_p13  ;;  %p2623_p3 = por %p2622_p0, %p2621_p12 }
  0x3b   : > { %p2617_p10 = pneg %p2616_p9 }
  0x3d   : > { %p2624_p5 = pnand %p2623_p3, %p2617_p10 }
  0x3f   : > { %2627 = shalt.err (!%p2624_p5)
}
  0x40   : > { %s2757_s21 = smov 1664   ;;  %s2758_s22 = smov 104  }
  0x41   : > { %2497 = dma.hbm_to_vmem [thread:$0]  (!%p2857_p11), %s3375_s2, 3328, %s2861_s7, [#allocation3], %s2757_s21, %s2757_s21, %s2758_s22  }
  0x42   : > { %s107_s6 = sadd.s32 1, %s2740_s17  ;;  %s35_s8 = sadd.s32 1, %s2748_s19 }
  0x43   : > { %p114_p13 = scmp.ne.s32.totalorder %s2740_s17, %s2736_s16  ;;  %p37_p7 = scmp.ge.s32.totalorder %s35_s8, 2 }
  0x44   : > { %p115_p1 = scmp.eq.s32.totalorder %s2752_s20, 0  ;;  %p2509_p6 = scmp.lt.s32.totalorder %s2752_s20, 2 }
  0x45   : > { %p2919_p4 = por %p2829_p2, %p114_p13  ;;  %s3401_s8 = smov (%p37_p7, %s35_s8), 0 }
  0x46   : > { %p116_p9 = por %p115_p1, %p114_p13  ;;  %s205_s5 = sand.u32 1, %s2740_s17  }
  0x47   : > { %s3388_s9 = scalar_select %p2919_p4, 1, 0 }
  0x48   : > { %s102_s10 = ssub.s32 %s2748_s19, %s3401_s8  ;;  %s2467_s7 = smul.u32 48, %s205_s5 }
  0x49   : > { %p105_p10 = scmp.eq.s32.totalorder %s102_s10, 0  ;;  %s2468_s11 = smul.u32 768, %s2748_s19 }
  0x4a   : > { %p2930_p11 = pnand %p2509_p6, %p116_p9  ;;  %s209_s21 = scalar_lea.vmem [#allocation9], %s2467_s7 }
  0x4b   : > { %s2935_s24 = scalar_select %p105_p10, %s2740_s17, %s107_s6  }
  0x4c   : > { %s2940_s30 = scalar_lea.hbm %s3376_s3, %s2468_s11  ;;  %s218_s22 = sshll.u32 %s209_s21, 4  ;;  %s2942_s22 = int_to_ptr.vmem [resolvable:$true] %s218_s22 }
  0x4d   : > { %s2944_s28 = scalar_lea.sflag [#allocation10], %s205_s5  ;;  %s2628_s29 = scalar_lea.hbm %s2940_s30, 768 }
  0x4e   : > { %p2629_p2 = scmp.ne.s32.totalorder %s2940_s30, %s2628_s29  ;;  %p2630_p12 = pneg %p2930_p11 }
  0x4f   : > { %s2633_s11 = scalar_lea.hbm %s3376_s3, 1536  ;;  %p2634_p5 = scmp.lt.u32.totalorder %s2940_s30, %s3376_s3 }
  0x50   : > { %p2631_p0 = pnand %p2630_p12, %p2629_p2  ;;  %p2635_p13 = scmp.lt.u32.totalorder %s2633_s11, %s2628_s29 }
  0x51   : > { %p2637_p1 = scmp.lt.u32.totalorder %s2628_s29, %s2940_s30 }
  0x52   : > { %p2632_p3 = pneg %p2631_p0  ;;  %p2636_p7 = por %p2635_p13, %p2634_p5 }
  0x54   : > { %p2638_p6 = por %p2637_p1, %p2636_p7 }
  0x56   : > { %p2639_p9 = pnand %p2638_p6, %p2632_p3 }
  0x58   : > { %2642 = shalt.err (!%p2639_p9)
}
  0x59   : > { %s2643_s5 = scalar_lea.vmem %s2942_s22, 768  ;;  %s2759_s7 = smov [#allocation9]  }
  0x5a   : > { %p2644_p10 = scmp.ne.s32.totalorder %s2942_s22, %s2643_s5  ;;  %s2648_s21 = sshll.u32 %s2759_s7, 4  ;;  %s2649_s21 = int_to_ptr.vmem [resolvable:$false] %s2648_s21 }
  0x5b   : > { %s2650_s6 = scalar_lea.vmem %s2649_s21, 1536  ;;  %p2651_p4 = scmp.lt.s32.totalorder %s2942_s22, %s2649_s21 }
  0x5c   : > { %p2646_p2 = pnand %p2644_p10, %p2630_p12  ;;  %p2652_p5 = scmp.lt.s32.totalorder %s2650_s6, %s2643_s5 }
  0x5e   : > { %p2647_p0 = pneg %p2646_p2  ;;  %p2653_p13 = por %p2652_p5, %p2651_p4 }
  0x60   : > { %p2654_p7 = pnand %p2653_p13, %p2647_p0 }
  0x62   : > { %2657 = shalt.err (!%p2654_p7)
}
  0x63   : > { %s2760_s29 = smov 128   ;;  %s2761_s10 = smov 8  }
  0x64   : > { %2501 = dma.hbm_to_vmem [thread:$0]  (!%p2930_p11), %s2940_s30, 768, %s2942_s22, %s2944_s28, %s2760_s29, %s2760_s29, %s2761_s10  }
  0x65   : > { %230 = sbr.rel (%p2845_p8) target bundleno = 441 (0x1b9), region = 36  ;;  %p3390_p12 = scmp.ne.s32.totalorder (!%p2845_p8), %s3382_s23, 0 }
  0x6c   : > { %2711 = dma.done.wait (%p3390_p12), [#allocation5], 16  }
  0x6d   : > { %2713 = vsyncadd (%p3390_p12), [#allocation5], 4294967280 }
  0x6e   : > { %2715 = dma.done.wait (%p3390_p12), [#allocation6], 16  }
  0x6f   : > { %2717 = vsyncadd (%p3390_p12), [#allocation6], 4294967280 }
  0x70   : > { %2719 = dma.done.wait (%p3390_p12), [#allocation3], 3328  }
  0x71   : > { %2721 = vsyncadd (%p3390_p12), [#allocation3], 4294963968  ;;  %s2987_s27 = sand.u32 1, %s2736_s16   ;;  %p3391_p8 = scmp.ne.s32.totalorder %s3384_s25, 0 }
  0x72   : > { %s2469_s12 = smul.u32 48, %s2987_s27  ;;  %s245_s30 = scalar_lea.sflag [#allocation10], %s2987_s27 }
  0x74   : > { %s2991_s22 = scalar_lea.vmem [#allocation9], %s2469_s12 }
  0x75   : > { %2723 = dma.done.wait (%p3391_p8), %s245_s30, 768  }
  0x76   : > { %2725 = vsyncadd (%p3391_p8), %s245_s30, 4294966528 }
  0x77   : > { %253 = sfence }
  0x78   : > { %v277_v0 = vld [vmem:[#allocation8 + $0x8] sm:$0xff]  ;;  %v290_v1 = vld [vmem:[#allocation8 + $0x70] sm:$0xff]  ;;  %v276_v2 = vld [vmem:[#allocation8] sm:$0xff]  ;;  %s2997_s23 = sld [smem:[#allocation2]]  ;;  %v2762_v5 = vmov 0.0   ;;  %s3002_s28 = sld [smem:[#allocation2 + $0x1]] }
  0x79   : > { %v2999_v3 = vpack.c.bf16 %v290_v1, %v277_v0  ;;  %v289_v4 = vld [vmem:[#allocation8 + $0x68] sm:$0xff]  ;;  %403 = vmatprep.mubr.f32.mxu0 %v2762_v5  ;;  %v279_v6 = vld [vmem:[#allocation8 + $0x18] sm:$0xff]  ;;  %v292_v7 = vld [vmem:[#allocation8 + $0x80] sm:$0xff]  ;;  %480 = vmatprep.mubr.f32.mxu1 %v2762_v5  ;;  %s2244_s25 = sld [smem:[#allocation2 + $0x2]]  ;;  %s3012_s11 = sld [smem:[#allocation7]]  ;;  %vm332_vm0 = vcmask 130048  }
  0x7a   : > { %v3005_v8 = vpack.c.bf16 %v289_v4, %v276_v2  ;;  %v3007_v9 = vpack.c.bf16 %v292_v7, %v279_v6  ;;  %v281_v10 = vld [vmem:[#allocation8 + $0x28] sm:$0xff]  ;;  %v294_v11 = vld [vmem:[#allocation8 + $0x90] sm:$0xff]  ;;  %v291_v16 = vld [vmem:[#allocation8 + $0x78] sm:$0xff]  ;;  %s3050_s13 = sld [smem:[#allocation2 + $0x3]]  ;;  %s3052_s14 = sld [smem:[#allocation2 + $0x4]]  ;;  %vm888_vm1 = vcmask 523264  }
  0x7b   : > { %2384 = vmatprep.subr.bf16.mxu0 %v2999_v3  ;;  %v3010_v12 = vpack.c.bf16 %v294_v11, %v281_v10  ;;  %v278_v13 = vld [vmem:[#allocation8 + $0x10] sm:$0xff]  ;;  %v283_v18 = vld [vmem:[#allocation8 + $0x38] sm:$0xff]  ;;  %v296_v19 = vld [vmem:[#allocation8 + $0xa0] sm:$0xff]  ;;  %s3056_s5 = sld [smem:[#allocation2 + $0x5]]  ;;  %s3091_s7 = sld [smem:[#allocation7 + $0x1]] }
  0x7c   : > { %2386 = vmatpush1.bf16.msra.mxu0 %v3005_v8  ;;  %2388 = vmatprep.subr.bf16.mxu1 %v3007_v9  ;;  %v3017_v14 = vld [vmem:[%s2991_s22] sm:$0xff]  ;;  %v3020_v15 = vld [vmem:[%s2991_s22 + $0x10] sm:$0xff]  ;;  %v3023_v17 = vpack.c.bf16 %v291_v16, %v278_v13  ;;  %v3026_v20 = vld [vmem:[%s2991_s22 + $0x8] sm:$0xff]  ;;  %v3032_v23 = vpack.c.bf16 %v296_v19, %v283_v18  ;;  %s3135_s21 = sld [smem:[#allocation2 + $0x6]]  ;;  %s3137_s6 = sld [smem:[#allocation2 + $0x7]] }
  0x7d   : > { %2392 = vmatprep.subr.bf16.mxu0 %v3010_v12  ;;  %v3029_v21 = vld [vmem:[%s2991_s22 + $0x20] sm:$0xff]  ;;  %v3035_v24 = vld [vmem:[%s2991_s22 + $0x18] sm:$0xff]  ;;  %v3038_v25 = vld [vmem:[%s2991_s22 + $0x28] sm:$0xff]  ;;  %s3142_s29 = sld [smem:[#allocation2 + $0x8]]  ;;  %s3165_s10 = sld [smem:[#allocation7 + $0x2]] }
  0x7e   : > { %v311_v22 = vstv %s2997_s23  ;;  %v315_v27 = vstv %s3002_s28  ;;  %2390 = vmatpush1.bf16.msra.mxu1 %v3023_v17  ;;  %v280_v38 = vld [vmem:[#allocation8 + $0x20] sm:$0xff]  ;;  %v293_v39 = vld [vmem:[#allocation8 + $0x88] sm:$0xff]  ;;  %v282_v41 = vld [vmem:[#allocation8 + $0x30] sm:$0xff]  ;;  %s2470_s12 = smul.u32 624, %s2987_s27  ;;  %p3392_p11 = scmp.ne.s32.totalorder %s3388_s9, 0 }
  0x7f   : > { %v312_v26 = vmul.f32 %v311_v22, %v3017_v14  ;;  %v313_v28 = vmul.f32 %v311_v22, %v3026_v20  ;;  %v316_v29 = vmul.f32 %v3020_v15, %v315_v27  ;;  %v321_v30 = vstv %s2244_s25  ;;  %2396 = vmatprep.subr.bf16.mxu1 %v3032_v23  ;;  %v295_v42 = vld [vmem:[#allocation8 + $0x98] sm:$0xff]  ;;  %v285_v43 = vld [vmem:[#allocation8 + $0x48] sm:$0xff]  ;;  %v298_v46 = vld [vmem:[#allocation8 + $0xb0] sm:$0xff]  ;;  %s2471_s22 = smul.u32 9984, %s2744_s18  ;;  %s2088_s18 = scalar_lea.sflag [#allocation4], %s2987_s27 }
  0x80   : > { %v317_v31 = vmul.f32 %v3035_v24, %v315_v27  ;;  %v322_v32 = vmul.f32 %v3029_v21, %v321_v30  ;;  %v323_v33 = vmul.f32 %v3038_v25, %v321_v30  ;;  %v327_v36 = vstv %s3012_s11  ;;  %v287_v47 = vld [vmem:[#allocation8 + $0x58] sm:$0xff]  ;;  %v300_v48 = vld [vmem:[#allocation8 + $0xc0] sm:$0xff]  ;;  %v297_v58 = vld [vmem:[#allocation8 + $0xa8] sm:$0xff]  ;;  %s3231_s30 = scalar_lea.vmem [#allocation11], %s2470_s12 }
  0x81   : > { %v318_v34 = vadd.f32 %v316_v29, %v312_v26  ;;  %v3054_v49 = vpack.c.bf16 %v293_v39, %v280_v38  ;;  %v3060_v51 = vpack.c.bf16 %v295_v42, %v282_v41  ;;  %v3062_v52 = vpack.c.bf16 %v298_v46, %v285_v43  ;;  %v284_v57 = vld [vmem:[#allocation8 + $0x40] sm:$0xff]  ;;  %v286_v59 = vld [vmem:[#allocation8 + $0x50] sm:$0xff]  ;;  %v299_v60 = vld [vmem:[#allocation8 + $0xb8] sm:$0xff]  ;;  %s2104_s23 = sshll.u32 %s3231_s30, 4  ;;  %s3318_s11 = scalar_lea.hbm %s3377_s4, %s2471_s22  ;;  %s3320_s23 = int_to_ptr.vmem [resolvable:$true] %s2104_s23 }
  0x82   : > { %v319_v35 = vadd.f32 %v317_v31, %v313_v28  ;;  %v3064_v53 = vpack.c.bf16 %v300_v48, %v287_v47  ;;  %v904_v55 = vstv %s3050_s13  ;;  %v908_v56 = vstv %s3052_s14  ;;  %v288_v61 = vld [vmem:[#allocation8 + $0x60] sm:$0xff]  ;;  %v301_v62 = vld [vmem:[#allocation8 + $0xc8] sm:$0xff]  ;;  %s2658_s13 = scalar_lea.vmem %s3320_s23, 9984  ;;  %s2763_s14 = smov [#allocation11]  }
  0x83   : > { %v324_v37 = vadd.f32 %v322_v32, %v318_v34  ;;  %v905_v63 = vmul.f32 %v904_v55, %v3017_v14  ;;  %v909_v0 = vmul.f32 %v3020_v15, %v908_v56  ;;  %v3087_v1 = vpack.c.bf16 %v297_v58, %v284_v57  ;;  %p2659_p4 = scmp.ne.s32.totalorder %s3320_s23, %s2658_s13 }
  0x84   : > { %v325_v40 = vadd.f32 %v323_v33, %v319_v35  ;;  %v914_v2 = vstv %s3056_s5  ;;  %v3093_v4 = vpack.c.bf16 %v299_v60, %v286_v59  ;;  %v3095_v6 = vpack.c.bf16 %v301_v62, %v288_v61  ;;  %s2662_s5 = sshll.u32 %s2763_s14, 4  ;;  %s2663_s5 = int_to_ptr.vmem [resolvable:$false] %s2662_s5 }
  0x85   : > { %v328_v44 = vadd.f32 %v327_v36, %v324_v37  ;;  %v906_v7 = vmul.f32 %v904_v55, %v3026_v20  ;;  %v911_v10 = vadd.f32 %v909_v0, %v905_v63  ;;  %v915_v11 = vmul.f32 %v3029_v21, %v914_v2  ;;  %p2660_p3 = pnand %p2659_p4, %p3392_p11  ;;  %p2665_p6 = scmp.lt.s32.totalorder %s3320_s23, %s2663_s5 }
  0x86   : > { %v329_v45 = vadd.f32 %v327_v36, %v325_v40  ;;  %v910_v13 = vmul.f32 %v3035_v24, %v908_v56  ;;  %v916_v19 = vmul.f32 %v3038_v25, %v914_v2  ;;  %v920_v22 = vstv %s3091_s7  ;;  %s2664_s7 = scalar_lea.vmem %s2663_s5, 19968 }
  0x87   : > { %v3058_v50 = vmax.f32 %v328_v44, 0.0  ;;  %v917_v16 = vadd.f32 %v915_v11, %v911_v10  ;;  %v1496_v31 = vstv %s3135_s21  ;;  %v1500_v32 = vstv %s3137_s6  ;;  %p2661_p1 = pneg %p2660_p3  ;;  %p2666_p9 = scmp.lt.s32.totalorder %s2664_s7, %s2658_s13 }
  0x88   : > { %v3070_v54 = vmax.f32 %v329_v45, 0.0  ;;  %v912_v18 = vadd.f32 %v910_v13, %v906_v7  ;;  %v1497_v33 = vmul.f32 %v1496_v31, %v3017_v14  ;;  %v1501_v34 = vmul.f32 %v3020_v15, %v1500_v32 }
  0x89   : > { %2245 = vmatmul.mubr.msk.f32.vlgmr.msra.gmra.mrb[0].mxu0 %vm332_vm0, %v3058_v50  ;;  %2247 = vmatmul.mubr.msk.f32.vlgmr.msra.gmra.mrb[0].mxu1 %vm332_vm0, %v3058_v50  ;;  %v921_v26 = vadd.f32 %v920_v22, %v917_v16  ;;  %v1506_v35 = vstv %s3142_s29  ;;  %v1498_v15 = vmul.f32 %v1496_v31, %v3026_v20  ;;  %v1502_v37 = vmul.f32 %v3035_v24, %v1500_v32  ;;  %p2667_p10 = por %p2666_p9, %p2665_p6 }
  0x8a   : > { %2394 = vmatpush1.bf16.msra.mxu0 %v3054_v49  ;;  %409 = vmatprep.mubr.f32.mxu0 %v2762_v5  ;;  %v918_v27 = vadd.f32 %v916_v19, %v912_v18  ;;  %v1507_v36 = vmul.f32 %v3029_v21, %v1506_v35  ;;  %v1503_v14 = vadd.f32 %v1501_v34, %v1497_v33  ;;  %v1512_v20 = vstv %s3165_s10 }
  0x8b   : > { %2398 = vmatpush1.bf16.msra.mxu1 %v3060_v51  ;;  %486 = vmatprep.mubr.f32.mxu1 %v2762_v5  ;;  %v923_v28 = vmax.f32 %v921_v26, 0.0  ;;  %v1504_v38 = vadd.f32 %v1502_v37, %v1498_v15  ;;  %v1508_v39 = vmul.f32 %v3038_v25, %v1506_v35  ;;  %p2668_p2 = pnand %p2667_p10, %p2661_p1 }
  0x8c   : > { %2400 = vmatprep.subr.bf16.mxu0 %v3062_v52  ;;  %2404 = vmatprep.subr.bf16.mxu1 %v3064_v53  ;;  %v922_v29 = vadd.f32 %v920_v22, %v918_v27  ;;  %v1509_v21 = vadd.f32 %v1507_v36, %v1503_v14 }
  0x8d   : > { %2246 = vmatmul.mubr.msk.f32.gmra.mrb[2].mxu0 %vm332_vm0, %v3070_v54  ;;  %2248 = vmatmul.mubr.msk.f32.gmra.mrb[2].mxu1 %vm332_vm0, %v3070_v54  ;;  %v1510_v24 = vadd.f32 %v1508_v39, %v1504_v38 }
  0x8e   : > { %557 = vmatprep.mubr.f32.mxu0 %v2762_v5  ;;  %634 = vmatprep.mubr.f32.mxu1 %v2762_v5  ;;  %v924_v30 = vmax.f32 %v922_v29, 0.0 }
  0x91   : > { %2249 = vmatmul.mubr.msk.f32.vlgmr.msra.gmra.mrb[4].mxu0 %vm332_vm0, %v3058_v50  ;;  %2251 = vmatmul.mubr.msk.f32.vlgmr.msra.gmra.mrb[4].mxu1 %vm332_vm0, %v3058_v50 }
  0x92   : > { %2402 = vmatpush1.bf16.msra.mxu0 %v3087_v1  ;;  %563 = vmatprep.mubr.f32.mxu0 %v2762_v5 }
  0x93   : > { %2406 = vmatpush1.bf16.msra.mxu1 %v3093_v4  ;;  %640 = vmatprep.mubr.f32.mxu1 %v2762_v5 }
  0x94   : > { %2408 = vmatprep.subr.bf16.mxu0 %v3095_v6  ;;  %2412 = vmatprep.subr.bf16.mxu1 %v2999_v3 }
  0x95   : > { %2250 = vmatmul.mubr.msk.f32.gmra.mrb[6].mxu0 %vm332_vm0, %v3070_v54  ;;  %2252 = vmatmul.mubr.msk.f32.gmra.mrb[6].mxu1 %vm332_vm0, %v3070_v54 }
  0x96   : > { %711 = vmatprep.mubr.f32.mxu0 %v2762_v5  ;;  %788 = vmatprep.mubr.f32.mxu1 %v2762_v5 }
  0x99   : > { %2253 = vmatmul.mubr.msk.f32.vlgmr.msra.gmra.mrb[8].mxu0 %vm332_vm0, %v3058_v50  ;;  %2255 = vmatmul.mubr.msk.f32.vlgmr.msra.gmra.mrb[8].mxu1 %vm332_vm0, %v3058_v50 }
  0x9a   : > { %2410 = vmatpush3.bf16.msra.mxu0 %v3095_v6  ;;  %717 = vmatprep.mubr.f32.mxu0 %v2762_v5 }
  0x9b   : > { %2414 = vmatpush1.bf16.msra.mxu1 %v3005_v8  ;;  %794 = vmatprep.mubr.f32.mxu1 %v2762_v5 }
  0x9c   : > { %2416 = vmatprep.subr.bf16.mxu0 %v3007_v9  ;;  %2420 = vmatprep.subr.bf16.mxu1 %v3010_v12 }
  0x9d   : > { %2254 = vmatmul.mubr.msk.f32.gmra.mrb[10].mxu0 %vm332_vm0, %v3070_v54  ;;  %2256 = vmatmul.mubr.msk.f32.gmra.mrb[10].mxu1 %vm332_vm0, %v3070_v54 }
  0x9e   : > { %2366 = vmatprep.mubr.msk.f32.mxu0 %vm332_vm0, %v3058_v50  ;;  %995 = vmatprep.mubr.f32.mxu1 %v2762_v5 }
  0xa1   : > { %2367 = vmatmul.mubr.msk.f32.vlgmr.msra.gmra.mrb[12].mxu0 %vm332_vm0, %v3070_v54  ;;  %2263 = vmatmul.mubr.msk.f32.vlgmr.msra.gmra.mrb[12].mxu1 %vm332_vm0, %v923_v28 }
  0xa2   : > { %2418 = vmatpush1.bf16.msra.mxu0 %v3023_v17  ;;  %1072 = vmatprep.mubr.f32.mxu0 %v2762_v5 }
  0xa3   : > { %2424 = vmatprep.subr.bf16.mxu0 %v3032_v23  ;;  %2422 = vmatpush1.bf16.msra.mxu1 %v3054_v49 }
  0xa4   : > { %1001 = vmatprep.mubr.f32.mxu1 %v2762_v5  ;;  %2428 = vmatprep.subr.bf16.mxu1 %v3062_v52 }
  0xa5   : > { %2265 = vmatmul.mubr.msk.f32.vlgmr.msra.gmra.mrb[14].mxu0 %vm332_vm0, %v923_v28  ;;  %2264 = vmatmul.mubr.msk.f32.gmra.mrb[14].mxu1 %vm332_vm0, %v924_v30 }
  0xa6   : > { %2426 = vmatpush1.bf16.msra.mxu0 %v3060_v51  ;;  %1078 = vmatprep.mubr.f32.mxu0 %v2762_v5 }
  0xa7   : > { %1149 = vmatprep.mubr.f32.mxu1 %v2762_v5  ;;  %2432 = vmatprep.subr.bf16.mxu0 %v3064_v53 }
  0xa9   : > { %2266 = vmatmul.mubr.msk.f32.gmra.mrb[16].mxu0 %vm332_vm0, %v924_v30  ;;  %2267 = vmatmul.mubr.msk.f32.vlgmr.msra.gmra.mrb[16].mxu1 %vm332_vm0, %v923_v28 }
  0xaa   : > { %1226 = vmatprep.mubr.f32.mxu0 %v2762_v5  ;;  %2430 = vmatpush1.bf16.msra.mxu1 %v3087_v1 }
  0xab   : > { %1155 = vmatprep.mubr.f32.mxu1 %v2762_v5  ;;  %2436 = vmatprep.subr.bf16.mxu1 %v3095_v6 }
  0xad   : > { %2269 = vmatmul.mubr.msk.f32.vlgmr.msra.gmra.mrb[18].mxu0 %vm332_vm0, %v923_v28  ;;  %2268 = vmatmul.mubr.msk.f32.gmra.mrb[18].mxu1 %vm332_vm0, %v924_v30 }
  0xae   : > { %2434 = vmatpush1.bf16.msra.mxu0 %v3093_v4  ;;  %1232 = vmatprep.mubr.f32.mxu0 %v2762_v5 }
  0xaf   : > { %1303 = vmatprep.mubr.f32.mxu1 %v2762_v5  ;;  %2440 = vmatprep.subr.bf16.mxu0 %v2999_v3  ;;  %v1513_v3 = vadd.f32 %v1512_v20, %v1509_v21 }
  0xb1   : > { %2270 = vmatmul.mubr.msk.f32.gmra.mrb[20].mxu0 %vm332_vm0, %v924_v30  ;;  %2271 = vmatmul.mubr.msk.f32.vlgmr.msra.gmra.mrb[20].mxu1 %vm332_vm0, %v923_v28  ;;  %v1515_v25 = vmax.f32 %v1513_v3, 0.0 }
  0xb2   : > { %1380 = vmatprep.mubr.f32.mxu0 %v2762_v5  ;;  %2438 = vmatpush3.bf16.msra.mxu1 %v3095_v6 }
  0xb3   : > { %1309 = vmatprep.mubr.f32.mxu1 %v2762_v5  ;;  %2444 = vmatprep.subr.bf16.mxu1 %v3007_v9  ;;  %v1514_v9 = vadd.f32 %v1512_v20, %v1510_v24 }
  0xb5   : > { %2273 = vmatmul.mubr.msk.f32.vlgmr.msra.gmra.mrb[22].mxu0 %vm332_vm0, %v923_v28  ;;  %2272 = vmatmul.mubr.msk.f32.gmra.mrb[22].mxu1 %vm332_vm0, %v924_v30 }
  0xb6   : > { %2442 = vmatpush1.bf16.msra.mxu0 %v3005_v8  ;;  %1386 = vmatprep.mubr.f32.mxu0 %v2762_v5  ;;  %v1516_v8 = vmax.f32 %v1514_v9, 0.0 }
  0xb7   : > { %2373 = vmatprep.mubr.msk.f32.mxu1 %vm332_vm0, %v923_v28  ;;  %2448 = vmatprep.subr.bf16.mxu0 %v3010_v12 }
  0xb9   : > { %2274 = vmatmul.mubr.msk.f32.gmra.mrb[24].mxu0 %vm332_vm0, %v924_v30  ;;  %2374 = vmatmul.mubr.msk.f32.vlgmr.msra.gmra.mrb[24].mxu1 %vm332_vm0, %v924_v30 }
  0xba   : > { %1587 = vmatprep.mubr.f32.mxu0 %v2762_v5  ;;  %2446 = vmatpush1.bf16.msra.mxu1 %v3023_v17 }
  0xbb   : > { %1664 = vmatprep.mubr.f32.mxu1 %v2762_v5  ;;  %2452 = vmatprep.subr.bf16.mxu1 %v3032_v23 }
  0xbd   : > { %2307 = vmatmul.mubr.msk.f32.vlgmr.msra.gmra.mrb[26].mxu0 %vm332_vm0, %v1515_v25  ;;  %2309 = vmatmul.mubr.msk.f32.vlgmr.msra.gmra.mrb[26].mxu1 %vm332_vm0, %v1515_v25 }
  0xbe   : > { %2450 = vmatpush1.bf16.msra.mxu0 %v3054_v49  ;;  %1593 = vmatprep.mubr.f32.mxu0 %v2762_v5 }
  0xbf   : > { %2454 = vmatpush1.bf16.msra.mxu1 %v3060_v51  ;;  %1670 = vmatprep.mubr.f32.mxu1 %v2762_v5 }
  0xc0   : > { %2456 = vmatprep.subr.bf16.mxu0 %v3062_v52  ;;  %2460 = vmatprep.subr.bf16.mxu1 %v3064_v53 }
  0xc1   : > { %2308 = vmatmul.mubr.msk.f32.gmra.mrb[28].mxu0 %vm332_vm0, %v1516_v8  ;;  %2310 = vmatmul.mubr.msk.f32.gmra.mrb[28].mxu1 %vm332_vm0, %v1516_v8 }
  0xc2   : > { %1741 = vmatprep.mubr.f32.mxu0 %v2762_v5  ;;  %1818 = vmatprep.mubr.f32.mxu1 %v2762_v5 }
  0xc5   : > { %2311 = vmatmul.mubr.msk.f32.vlgmr.msra.gmra.mrb[30].mxu0 %vm332_vm0, %v1515_v25  ;;  %2313 = vmatmul.mubr.msk.f32.vlgmr.msra.gmra.mrb[30].mxu1 %vm332_vm0, %v1515_v25 }
  0xc6   : > { %2458 = vmatpush1.bf16.msra.mxu0 %v3087_v1  ;;  %1747 = vmatprep.mubr.f32.mxu0 %v2762_v5 }
  0xc7   : > { %2462 = vmatpush1.bf16.msra.mxu1 %v3093_v4  ;;  %1824 = vmatprep.mubr.f32.mxu1 %v2762_v5 }
  0xc8   : > { %2464 = vmatprep.subr.bf16.mxu0 %v3095_v6 }
  0xc9   : > { %2312 = vmatmul.mubr.msk.f32.gmra.mrb[32].mxu0 %vm332_vm0, %v1516_v8  ;;  %2314 = vmatmul.mubr.msk.f32.gmra.mrb[32].mxu1 %vm332_vm0, %v1516_v8 }
  0xca   : > { %1895 = vmatprep.mubr.f32.mxu0 %v2762_v5  ;;  %1972 = vmatprep.mubr.f32.mxu1 %v2762_v5 }
  0xcd   : > { %2315 = vmatmul.mubr.msk.f32.vlgmr.msra.gmra.mrb[34].mxu0 %vm332_vm0, %v1515_v25  ;;  %2317 = vmatmul.mubr.msk.f32.vlgmr.msra.gmra.mrb[34].mxu1 %vm332_vm0, %v1515_v25 }
  0xce   : > { %2466 = vmatpush3.bf16.msra.mxu0 %v3095_v6  ;;  %1901 = vmatprep.mubr.f32.mxu0 %v2762_v5 }
  0xcf   : > { %1978 = vmatprep.mubr.f32.mxu1 %v2762_v5 }
  0xd1   : > { %2316 = vmatmul.mubr.msk.f32.gmra.mrb[36].mxu0 %vm332_vm0, %v1516_v8  ;;  %2318 = vmatmul.mubr.msk.f32.gmra.mrb[36].mxu1 %vm332_vm0, %v1516_v8 }
  0xd2   : > { %2380 = vmatprep.mubr.msk.f32.mxu0 %vm332_vm0, %v1515_v25 }
  0xd5   : > { %2381 = vmatmul.mubr.msk.f32.vlgmr.msra.gmra.mrb[38].mxu0 %vm332_vm0, %v1516_v8 }
 0x15c   : > { %v405_v12 = vpop.f32.mrb[0].mxu0  ;;  %v482_v17 = vpop.f32.mrb[0].mxu1 }
 0x15d   : > { %876 = vst [vmem:[%s3231_s30] sm:$0xff] %v405_v12  ;;  %v407_v5 = vpop.f32.mrb[1].mxu0  ;;  %878 = vst [vmem:[%s3231_s30 + $0x10] sm:$0xff] %v482_v17  ;;  %v484_v23 = vpop.f32.mrb[1].mxu1 }
 0x15e   : > { %877 = vst [vmem:[%s3231_s30 + $0x8] sm:$0xff] %v407_v5  ;;  %879 = vst [vmem:[%s3231_s30 + $0x18] sm:$0xff] %v484_v23 }
 0x160   : > { %v411_v40 = vpop.f32.mrb[2].mxu0  ;;  %v488_v41 = vpop.f32.mrb[2].mxu1 }
 0x161   : > { %890 = vst [vmem:[%s3231_s30 + $0x68] sm:$0xff] %v411_v40  ;;  %v413_v42 = vpop.f32.mrb[3].mxu0  ;;  %892 = vst [vmem:[%s3231_s30 + $0x78] sm:$0xff] %v488_v41  ;;  %v490_v43 = vpop.f32.mrb[3].mxu1 }
 0x162   : > { %891 = vst [vmem:[%s3231_s30 + $0x70] sm:$0xff] %v413_v42  ;;  %893 = vst [vmem:[%s3231_s30 + $0x80] sm:$0xff] %v490_v43 }
 0x164   : > { %v559_v44 = vpop.f32.mrb[4].mxu0  ;;  %v636_v45 = vpop.f32.mrb[4].mxu1 }
 0x165   : > { %880 = vst [vmem:[%s3231_s30 + $0x20] sm:$0xff] %v559_v44  ;;  %v561_v46 = vpop.f32.mrb[5].mxu0  ;;  %882 = vst [vmem:[%s3231_s30 + $0x30] sm:$0xff] %v636_v45  ;;  %v638_v47 = vpop.f32.mrb[5].mxu1 }
 0x166   : > { %881 = vst [vmem:[%s3231_s30 + $0x28] sm:$0xff] %v561_v46  ;;  %883 = vst [vmem:[%s3231_s30 + $0x38] sm:$0xff] %v638_v47 }
 0x168   : > { %v565_v48 = vpop.f32.mrb[6].mxu0  ;;  %v642_v49 = vpop.f32.mrb[6].mxu1 }
 0x169   : > { %894 = vst [vmem:[%s3231_s30 + $0x88] sm:$0xff] %v565_v48  ;;  %v567_v50 = vpop.f32.mrb[7].mxu0  ;;  %896 = vst [vmem:[%s3231_s30 + $0x98] sm:$0xff] %v642_v49  ;;  %v644_v51 = vpop.f32.mrb[7].mxu1 }
 0x16a   : > { %895 = vst [vmem:[%s3231_s30 + $0x90] sm:$0xff] %v567_v50  ;;  %897 = vst [vmem:[%s3231_s30 + $0xa0] sm:$0xff] %v644_v51 }
 0x16c   : > { %v713_v52 = vpop.f32.mrb[8].mxu0  ;;  %v790_v53 = vpop.f32.mrb[8].mxu1 }
 0x16d   : > { %884 = vst [vmem:[%s3231_s30 + $0x40] sm:$0xff] %v713_v52  ;;  %v715_v54 = vpop.f32.mrb[9].mxu0  ;;  %886 = vst [vmem:[%s3231_s30 + $0x50] sm:$0xff] %v790_v53  ;;  %v792_v55 = vpop.f32.mrb[9].mxu1 }
 0x16e   : > { %885 = vst [vmem:[%s3231_s30 + $0x48] sm:$0xff] %v715_v54  ;;  %887 = vst [vmem:[%s3231_s30 + $0x58] sm:$0xff] %v792_v55 }
 0x170   : > { %v719_v56 = vpop.f32.mrb[10].mxu0  ;;  %v796_v57 = vpop.f32.mrb[10].mxu1 }
 0x171   : > { %898 = vst [vmem:[%s3231_s30 + $0xa8] sm:$0xff] %v719_v56  ;;  %v721_v58 = vpop.f32.mrb[11].mxu0  ;;  %900 = vst [vmem:[%s3231_s30 + $0xb8] sm:$0xff] %v796_v57  ;;  %v798_v59 = vpop.f32.mrb[11].mxu1 }
 0x172   : > { %899 = vst [vmem:[%s3231_s30 + $0xb0] sm:$0xff] %v721_v58  ;;  %901 = vst [vmem:[%s3231_s30 + $0xc0] sm:$0xff] %v798_v59 }
 0x174   : > { %v2368_v60 = vpop.f32.mrb[12].mxu0  ;;  %v997_v61 = vpop.f32.mrb[12].mxu1 }
 0x175   : > { %902 = vst.msk [vmem:[%s3231_s30 + $0xc8] sm:$0xff] %vm888_vm1, %v2368_v60  ;;  %v867_v62 = vpop.f32.mrb[13].mxu0  ;;  %2277 = vst [vmem:[%s3231_s30 + $0xd0] sm:$0xff] %v997_v61  ;;  %v999_v63 = vpop.f32.mrb[13].mxu1 }
 0x176   : > { %889 = vst.msk [vmem:[%s3231_s30 + $0x60] sm:$0xff] %vm888_vm1, %v867_v62  ;;  %2278 = vst [vmem:[%s3231_s30 + $0xd8] sm:$0xff] %v999_v63 }
 0x178   : > { %v1074_v0 = vpop.f32.mrb[14].mxu0  ;;  %v1003_v1 = vpop.f32.mrb[14].mxu1 }
 0x179   : > { %2279 = vst [vmem:[%s3231_s30 + $0xe0] sm:$0xff] %v1074_v0  ;;  %v1076_v2 = vpop.f32.mrb[15].mxu0  ;;  %2290 = vst [vmem:[%s3231_s30 + $0x138] sm:$0xff] %v1003_v1  ;;  %v1005_v4 = vpop.f32.mrb[15].mxu1 }
 0x17a   : > { %2280 = vst [vmem:[%s3231_s30 + $0xe8] sm:$0xff] %v1076_v2  ;;  %2291 = vst [vmem:[%s3231_s30 + $0x140] sm:$0xff] %v1005_v4 }
 0x17c   : > { %v1080_v6 = vpop.f32.mrb[16].mxu0  ;;  %v1151_v7 = vpop.f32.mrb[16].mxu1 }
 0x17d   : > { %2292 = vst [vmem:[%s3231_s30 + $0x148] sm:$0xff] %v1080_v6  ;;  %v1082_v10 = vpop.f32.mrb[17].mxu0  ;;  %2281 = vst [vmem:[%s3231_s30 + $0xf0] sm:$0xff] %v1151_v7  ;;  %v1153_v11 = vpop.f32.mrb[17].mxu1 }
 0x17e   : > { %2293 = vst [vmem:[%s3231_s30 + $0x150] sm:$0xff] %v1082_v10  ;;  %2282 = vst [vmem:[%s3231_s30 + $0xf8] sm:$0xff] %v1153_v11 }
 0x180   : > { %v1228_v13 = vpop.f32.mrb[18].mxu0  ;;  %v1157_v16 = vpop.f32.mrb[18].mxu1 }
 0x181   : > { %2283 = vst [vmem:[%s3231_s30 + $0x100] sm:$0xff] %v1228_v13  ;;  %v1230_v18 = vpop.f32.mrb[19].mxu0  ;;  %2294 = vst [vmem:[%s3231_s30 + $0x158] sm:$0xff] %v1157_v16  ;;  %v1159_v19 = vpop.f32.mrb[19].mxu1 }
 0x182   : > { %2284 = vst [vmem:[%s3231_s30 + $0x108] sm:$0xff] %v1230_v18  ;;  %2295 = vst [vmem:[%s3231_s30 + $0x160] sm:$0xff] %v1159_v19 }
 0x184   : > { %v1234_v22 = vpop.f32.mrb[20].mxu0  ;;  %v1305_v26 = vpop.f32.mrb[20].mxu1 }
 0x185   : > { %2296 = vst [vmem:[%s3231_s30 + $0x168] sm:$0xff] %v1234_v22  ;;  %v1236_v27 = vpop.f32.mrb[21].mxu0  ;;  %2285 = vst [vmem:[%s3231_s30 + $0x110] sm:$0xff] %v1305_v26  ;;  %v1307_v28 = vpop.f32.mrb[21].mxu1 }
 0x186   : > { %2297 = vst [vmem:[%s3231_s30 + $0x170] sm:$0xff] %v1236_v27  ;;  %2286 = vst [vmem:[%s3231_s30 + $0x118] sm:$0xff] %v1307_v28 }
 0x188   : > { %v1382_v29 = vpop.f32.mrb[22].mxu0  ;;  %v1311_v30 = vpop.f32.mrb[22].mxu1 }
 0x189   : > { %2287 = vst [vmem:[%s3231_s30 + $0x120] sm:$0xff] %v1382_v29  ;;  %v1384_v31 = vpop.f32.mrb[23].mxu0  ;;  %2298 = vst [vmem:[%s3231_s30 + $0x178] sm:$0xff] %v1311_v30  ;;  %v1313_v32 = vpop.f32.mrb[23].mxu1 }
 0x18a   : > { %2288 = vst [vmem:[%s3231_s30 + $0x128] sm:$0xff] %v1384_v31  ;;  %2299 = vst [vmem:[%s3231_s30 + $0x180] sm:$0xff] %v1313_v32 }
 0x18c   : > { %v1388_v33 = vpop.f32.mrb[24].mxu0  ;;  %v2375_v34 = vpop.f32.mrb[24].mxu1 }
 0x18d   : > { %2300 = vst [vmem:[%s3231_s30 + $0x188] sm:$0xff] %v1388_v33  ;;  %v1390_v35 = vpop.f32.mrb[25].mxu0  ;;  %2302 = vst.msk [vmem:[%s3231_s30 + $0x198] sm:$0xff] %vm888_vm1, %v2375_v34  ;;  %v1459_v36 = vpop.f32.mrb[25].mxu1 }
 0x18e   : > { %2301 = vst [vmem:[%s3231_s30 + $0x190] sm:$0xff] %v1390_v35  ;;  %2289 = vst.msk [vmem:[%s3231_s30 + $0x130] sm:$0xff] %vm888_vm1, %v1459_v36 }
 0x190   : > { %v1589_v14 = vpop.f32.mrb[26].mxu0  ;;  %v1666_v15 = vpop.f32.mrb[26].mxu1 }
 0x191   : > { %2321 = vst [vmem:[%s3231_s30 + $0x1a0] sm:$0xff] %v1589_v14  ;;  %v1591_v37 = vpop.f32.mrb[27].mxu0  ;;  %2323 = vst [vmem:[%s3231_s30 + $0x1b0] sm:$0xff] %v1666_v15  ;;  %v1668_v21 = vpop.f32.mrb[27].mxu1 }
 0x192   : > { %2322 = vst [vmem:[%s3231_s30 + $0x1a8] sm:$0xff] %v1591_v37  ;;  %2324 = vst [vmem:[%s3231_s30 + $0x1b8] sm:$0xff] %v1668_v21 }
 0x194   : > { %v1595_v38 = vpop.f32.mrb[28].mxu0  ;;  %v1672_v39 = vpop.f32.mrb[28].mxu1 }
 0x195   : > { %2334 = vst [vmem:[%s3231_s30 + $0x208] sm:$0xff] %v1595_v38  ;;  %v1597_v20 = vpop.f32.mrb[29].mxu0  ;;  %2336 = vst [vmem:[%s3231_s30 + $0x218] sm:$0xff] %v1672_v39  ;;  %v1674_v3 = vpop.f32.mrb[29].mxu1 }
 0x196   : > { %2335 = vst [vmem:[%s3231_s30 + $0x210] sm:$0xff] %v1597_v20  ;;  %2337 = vst [vmem:[%s3231_s30 + $0x220] sm:$0xff] %v1674_v3 }
 0x198   : > { %v1743_v24 = vpop.f32.mrb[30].mxu0  ;;  %v1820_v25 = vpop.f32.mrb[30].mxu1 }
 0x199   : > { %2325 = vst [vmem:[%s3231_s30 + $0x1c0] sm:$0xff] %v1743_v24  ;;  %v1745_v9 = vpop.f32.mrb[31].mxu0  ;;  %2327 = vst [vmem:[%s3231_s30 + $0x1d0] sm:$0xff] %v1820_v25  ;;  %v1822_v8 = vpop.f32.mrb[31].mxu1 }
 0x19a   : > { %2326 = vst [vmem:[%s3231_s30 + $0x1c8] sm:$0xff] %v1745_v9  ;;  %2328 = vst [vmem:[%s3231_s30 + $0x1d8] sm:$0xff] %v1822_v8 }
 0x19c   : > { %v1749_v12 = vpop.f32.mrb[32].mxu0  ;;  %v1826_v17 = vpop.f32.mrb[32].mxu1 }
 0x19d   : > { %2338 = vst [vmem:[%s3231_s30 + $0x228] sm:$0xff] %v1749_v12  ;;  %v1751_v5 = vpop.f32.mrb[33].mxu0  ;;  %2340 = vst [vmem:[%s3231_s30 + $0x238] sm:$0xff] %v1826_v17  ;;  %v1828_v23 = vpop.f32.mrb[33].mxu1 }
 0x19e   : > { %2339 = vst [vmem:[%s3231_s30 + $0x230] sm:$0xff] %v1751_v5  ;;  %2341 = vst [vmem:[%s3231_s30 + $0x240] sm:$0xff] %v1828_v23 }
 0x1a0   : > { %v1897_v40 = vpop.f32.mrb[34].mxu0  ;;  %v1974_v41 = vpop.f32.mrb[34].mxu1 }
 0x1a1   : > { %2329 = vst [vmem:[%s3231_s30 + $0x1e0] sm:$0xff] %v1897_v40  ;;  %v1899_v42 = vpop.f32.mrb[35].mxu0  ;;  %2331 = vst [vmem:[%s3231_s30 + $0x1f0] sm:$0xff] %v1974_v41  ;;  %v1976_v43 = vpop.f32.mrb[35].mxu1 }
 0x1a2   : > { %2330 = vst [vmem:[%s3231_s30 + $0x1e8] sm:$0xff] %v1899_v42  ;;  %2332 = vst [vmem:[%s3231_s30 + $0x1f8] sm:$0xff] %v1976_v43 }
 0x1a4   : > { %v1903_v44 = vpop.f32.mrb[36].mxu0  ;;  %v1980_v45 = vpop.f32.mrb[36].mxu1 }
 0x1a5   : > { %2342 = vst [vmem:[%s3231_s30 + $0x248] sm:$0xff] %v1903_v44  ;;  %v1905_v46 = vpop.f32.mrb[37].mxu0  ;;  %2344 = vst [vmem:[%s3231_s30 + $0x258] sm:$0xff] %v1980_v45  ;;  %v1982_v47 = vpop.f32.mrb[37].mxu1 }
 0x1a6   : > { %2343 = vst [vmem:[%s3231_s30 + $0x250] sm:$0xff] %v1905_v46  ;;  %2345 = vst [vmem:[%s3231_s30 + $0x260] sm:$0xff] %v1982_v47 }
 0x1a8   : > { %v2382_v48 = vpop.f32.mrb[38].mxu0 }
 0x1a9   : > { %2346 = vst.msk [vmem:[%s3231_s30 + $0x268] sm:$0xff] %vm888_vm1, %v2382_v48  ;;  %v2051_v49 = vpop.f32.mrb[39].mxu0 }
 0x1aa   : > { %2333 = vst.msk [vmem:[%s3231_s30 + $0x200] sm:$0xff] %vm888_vm1, %v2051_v49 }
 0x1ab   : > { %2671 = shalt.err (!%p2668_p2)
}
 0x1ac   : > { %s2672_s21 = scalar_lea.hbm %s3318_s11, 9984  ;;  %s2676_s10 = scalar_lea.hbm %s3377_s4, 19968 }
 0x1ad   : > { %p2673_p0 = scmp.ne.s32.totalorder %s3318_s11, %s2672_s21  ;;  %p2677_p7 = scmp.lt.u32.totalorder %s3318_s11, %s3377_s4 }
 0x1ae   : > { %p2678_p12 = scmp.lt.u32.totalorder %s2676_s10, %s2672_s21  ;;  %p2680_p4 = scmp.lt.u32.totalorder %s2672_s21, %s3318_s11 }
 0x1af   : > { %p2674_p5 = pnand %p2673_p0, %p3392_p11 }
 0x1b0   : > { %p2679_p8 = por %p2678_p12, %p2677_p7 }
 0x1b1   : > { %p2675_p13 = pneg %p2674_p5 }
 0x1b2   : > { %p2681_p3 = por %p2680_p4, %p2679_p8 }
 0x1b4   : > { %p2682_p1 = pnand %p2681_p3, %p2675_p13 }
 0x1b6   : > { %2685 = shalt.err (!%p2682_p1)
}
 0x1b7   : > { %s2764_s22 = smov 1664   ;;  %s2765_s28 = smov 104  }
 0x1b8   : > { %2486 = dma.vmem_to_hbm [thread:$0]  (%p3392_p11), %s3320_s23, 9984, %s3318_s11, %s2088_s18, %s2764_s22, %s2764_s22, %s2765_s28  }
 0x1b9 PF: > { %s2119_s25 = sand.u32 1, %s2732_s15   ;;  %p3393_p6 = scmp.ne.s32.totalorder %s3385_s26, 0 }
 0x1ba   : > { %p3394_p9 = scmp.ge.s32.totalorder %s2752_s20, 2  ;;  %s2120_s13 = scalar_lea.sflag [#allocation4], %s2119_s25 }
 0x1bc   : > { %p2503_p10 = pnand %p3394_p9, %p3393_p6 }
 0x1be   : > { %2727 = dma.done.wait (!%p2503_p10), %s2120_s13, 9984  }
 0x1bf   : > { %2729 = vsyncadd (!%p2503_p10), %s2120_s13, 4294957312  ;;  %s23_s20 = sadd.s32 1, %s2752_s20   ;;  %s3395_s15 = smov %s2736_s16 }
 0x1c0   : > { %p20_p2 = scmp.ge.s32.totalorder %s23_s20, 4   ;;  %s3396_s16 = smov %s2740_s17 }
 0x1c1   : > { %s3397_s17 = smov %s2935_s24  ;;  %s3398_s18 = smov %s2748_s19 }
 0x1c2   : > { %s3399_s19 = smov %s3401_s8  ;;  %22 = sbr.rel (!%p20_p2) target bundleno = 9 (0x9), region = 100 }
 0x1c9   :  { %2125 = vsyncpa [#allocation3], 1 }
 0x1ca   :  { %2127 = vsyncpa [#allocation3 + $0x1], 1 }
 0x1cb   :  { %2128 = vsyncpa [#allocation10], 1 }
 0x1cc   :  { %2130 = vsyncpa [#allocation10 + $0x1], 1 }
 0x1cd   :  { %2131 = vsyncpa [#allocation4], 1 }
 0x1ce   :  { %2133 = vsyncpa [#allocation4 + $0x1], 1 }
 0x1cf   :  { %2134 = vsyncpa [#allocation5], 1 }
 0x1d0   :  { %2136 = vsyncpa [#allocation5 + $0x1], 1 }
 0x1d1   :  { %2137 = vsyncpa [#allocation6], 1 }
 0x1d2   :  { %2139 = vsyncpa [#allocation6 + $0x1], 1 }

</bundles_post_ra>
